<compile_context>
chip_gen: v5e
topology: v5e:2x2
jax: 0.10.0
libtpu: 0.0.40
codegen_flags: <defaults>
</compile_context>

<pallas_src>
import jax
import jax.numpy as jnp
from jax.experimental import pallas as pl
from jax.experimental.pallas import tpu as pltpu

FOCUSING_PARAM = 2
BALANCE_PARAM = 0.25

# VMEM working-set budget used to size the row tile, and the explicit scoped limit
# passed to the compiler.  48 MiB is safe on every generation (v5e/v6e: 128 MiB
# physical; v7x: 64 MiB physical per TensorCore).
_VMEM_WORKSET_BYTES = 36 * 1024 * 1024
_VMEM_LIMIT_BYTES = 48 * 1024 * 1024


def _round_up(x, m):
    return ((x + m - 1) // m) * m


def _focal_loss_kernel(logits_ref, target_ref, partial_ref):
    x = logits_ref[...].astype(jnp.float32)        # (TN, C) f32 math on all generations
    t = target_ref[...]                            # (TN, 1) int32 (-1 marks padded rows)

    # --- per-row cross entropy: nll = m + log(sum(exp(x - m))) - x[t] ---
    m = jnp.max(x, axis=-1, keepdims=True)                               # (TN, 1)
    lse = jnp.log(jnp.sum(jnp.exp(x - m), axis=-1, keepdims=True))       # (TN, 1)

    # Gather the target logit from raw x (not x - m) so the compare/select/sum can
    # overlap with the max reduce and z's live range stays short.
    class_ids = jax.lax.broadcasted_iota(jnp.int32, x.shape, 1)          # (TN, C)
    gathered = jnp.sum(jnp.where(class_ids == t, x, 0.0),
                       axis=-1, keepdims=True)                           # (TN, 1) == x[t]

    valid = (t >= 0).astype(jnp.float32)                                 # mask padded rows
    nll = (m + lse - gathered) * valid                                   # (TN, 1)

    # Per-tile partial sum, broadcast across the lane axis for an unmasked store.
    partial = jnp.sum(nll)
    partial_ref[...] = jnp.broadcast_to(jnp.reshape(partial, (1, 1)), (1, 128))


def focal_loss(logits, targets, *, tile_n=None):
    """logits: (N, C) float (f32 or bf16); targets: (N,) int class indices. Returns scalar."""
    n, c = logits.shape
    itemsize = jnp.dtype(logits.dtype).itemsize
    pack = max(8, 32 // itemsize)           # sublane packing: 8 for f32, 16 for bf16

    # Row cap from the VMEM budget, counting the double-buffered storage-dtype blocks
    # plus ~5x f32 (4-byte) elementwise temporaries for the in-flight compute tile.
    per_row_bytes = c * (2 * itemsize + 5 * 4) + 32
    rows_cap = max(pack, (_VMEM_WORKSET_BYTES // per_row_bytes) // pack * pack)
    if tile_n is not None:                  # only honor tile_n if the caller passes one
        rows_cap = max(pack, min(rows_cap, _round_up(int(tile_n), pack)))

    # Choose num_tiles first, then the tile size that minimizes padding.
    num_tiles = -(-n // rows_cap)
    tn = _round_up(-(-n // num_tiles), pack)
    n_pad = num_tiles * tn

    targets_i32 = targets.astype(jnp.int32)
    if n_pad != n:
        logits = jnp.pad(logits, ((0, n_pad - n), (0, 0)))
        targets_i32 = jnp.pad(targets_i32, (0, n_pad - n), constant_values=-1)
    targets2d = targets_i32.reshape(n_pad, 1)

    # Explicit scoped-VMEM limit: 2x double-buffered logits blocks + f32 temporaries
    # + targets blocks + headroom (v5e default is only 16 MiB; v6e/v7x default 32 MiB).
    vmem_need = (2 * tn * c * itemsize      # double-buffered logits blocks
                 + 5 * tn * c * 4           # f32 upcast + elementwise temporaries
                 + 4 * tn * 4               # targets blocks + row masks
                 + (2 << 20))               # partials / compiler scratch headroom
    vmem_limit = int(min(max(vmem_need, 16 << 20), _VMEM_LIMIT_BYTES))

    # TODO(synk): for vocab-scale C (a single row of logits approaching the VMEM
    # budget), also tile the class axis with an online-softmax running
    # (max, sum-exp, gathered-logit) carry.
    partials = pl.pallas_call(
        _focal_loss_kernel,
        out_shape=jax.ShapeDtypeStruct((num_tiles, 128), jnp.float32),
        grid=(num_tiles,),
        in_specs=[
            pl.BlockSpec((tn, c), lambda i: (i, 0)),
            pl.BlockSpec((tn, 1), lambda i: (i, 0)),
        ],
        out_specs=pl.BlockSpec((1, 128), lambda i: (i, 0)),
        compiler_params=pltpu.CompilerParams(
            dimension_semantics=("parallel",),   # independent per-tile partials
            vmem_limit_bytes=vmem_limit,
        ),
        cost_estimate=pl.CostEstimate(
            flops=int(5 * n_pad * c),
            transcendentals=int(n_pad * c),
            bytes_accessed=int(n_pad * c * itemsize + n_pad * 4 + num_tiles * 128 * 4),
        ),
    )(logits, targets2d)

    # Tiny scalar epilogue in the wrapper: mean over the true N, then focal transform.
    ce = jnp.sum(partials[:, 0]) * (1.0 / jnp.float32(n))
    logpt = -ce
    pt = jnp.exp(logpt)
    focal = -((1.0 - pt) ** FOCUSING_PARAM) * logpt
    return BALANCE_PARAM * focal


def focal_loss_ref(logits, targets):
    """Pure-JAX reference for sanity checking."""
    logp = jax.nn.log_softmax(logits.astype(jnp.float32), axis=-1)
    nll = -jnp.take_along_axis(logp, targets[:, None].astype(jnp.int32), axis=-1)[:, 0]
    ce = jnp.mean(nll)
    logpt = -ce
    pt = jnp.exp(logpt)
    return BALANCE_PARAM * (-((1.0 - pt) ** FOCUSING_PARAM) * logpt)


if __name__ == "__main__":
    key = jax.random.PRNGKey(0)
    k1, k2 = jax.random.split(key)

    # Small shapes consistent with the module's forward (N logits rows, C classes).
    N, C = 8, 16
    logits = jax.random.normal(k1, (N, C), dtype=jnp.float32)
    targets = jax.random.randint(k2, (N,), 0, C, dtype=jnp.int32)

    out = jax.block_until_ready(focal_loss(logits, targets))
    ref = focal_loss_ref(logits, targets)
    assert jnp.allclose(out, ref, atol=1e-5, rtol=1e-5), (out, ref)

    # Exercise a multi-tile (padded remainder, parallel grid) path as well.
    k3, k4 = jax.random.split(k1)
    N2, C2 = 1000, 128
    logits2 = jax.random.normal(k3, (N2, C2), dtype=jnp.float32)
    targets2 = jax.random.randint(k4, (N2,), 0, C2, dtype=jnp.int32)
    out2 = jax.block_until_ready(focal_loss(logits2, targets2, tile_n=256))
    ref2 = focal_loss_ref(logits2, targets2)
    assert jnp.allclose(out2, ref2, atol=1e-5, rtol=1e-5), (out2, ref2)

    print("KERNEL_OK")
</pallas_src>

<mosaic_0001>
module attributes {stable_mosaic.version = 11 : i64} {
  func.func @_focal_loss_kernel(%arg0: i32, %arg1: memref<8x16xf32, #tpu.memory_space<vmem>>, %arg2: memref<8x1xi32, #tpu.memory_space<vmem>>, %arg3: memref<1x128xf32, #tpu.memory_space<vmem>>) attributes {dimension_semantics = [#tpu.dimension_semantics<parallel>], iteration_bounds = array<i64: 1>, scalar_prefetch = 0 : i64, scratch_operands = 0 : i64, tpu.core_type = #tpu.core_type<tc>, window_params = [{transform_indices = @transform_0, window_bounds = array<i64: 8, 16>}, {transform_indices = @transform_1, window_bounds = array<i64: 8, 1>}, {transform_indices = @transform_2, window_bounds = array<i64: 1, 128>}]} {
    %c0 = arith.constant 0 : index
    %c0_0 = arith.constant 0 : index
    %0 = vector.load %arg1[%c0, %c0_0] : memref<8x16xf32, #tpu.memory_space<vmem>>, vector<8x16xf32>
    %c0_1 = arith.constant 0 : index
    %c0_2 = arith.constant 0 : index
    %1 = vector.load %arg2[%c0_1, %c0_2] : memref<8x1xi32, #tpu.memory_space<vmem>>, vector<8x1xi32>
    %cst = arith.constant dense<0xFF800000> : vector<8xf32>
    %2 = vector.multi_reduction <maximumf>, %0, %cst [1] : vector<8x16xf32> to vector<8xf32>
    %3 = vector.shape_cast %2 : vector<8xf32> to vector<8x1xf32>
    %4 = vector.broadcast %3 : vector<8x1xf32> to vector<8x16xf32>
    %5 = arith.subf %0, %4 : vector<8x16xf32>
    %6 = math.exp %5 : vector<8x16xf32>
    %cst_3 = arith.constant dense<0.000000e+00> : vector<8xf32>
    %7 = vector.multi_reduction <add>, %6, %cst_3 [1] : vector<8x16xf32> to vector<8xf32>
    %8 = vector.shape_cast %7 : vector<8xf32> to vector<8x1xf32>
    %9 = math.log %8 : vector<8x1xf32>
    %10 = tpu.iota {dimensions = array<i32: 1>} : vector<8x16xi32>
    %11 = vector.broadcast %1 : vector<8x1xi32> to vector<8x16xi32>
    %12 = arith.cmpi eq, %10, %11 : vector<8x16xi32>
    %cst_4 = arith.constant 0.000000e+00 : f32
    %13 = vector.broadcast %cst_4 : f32 to vector<8x16xf32>
    %14 = arith.select %12, %0, %13 : vector<8x16xi1>, vector<8x16xf32>
    %cst_5 = arith.constant dense<0.000000e+00> : vector<8xf32>
    %15 = vector.multi_reduction <add>, %14, %cst_5 [1] : vector<8x16xf32> to vector<8xf32>
    %16 = vector.shape_cast %15 : vector<8xf32> to vector<8x1xf32>
    %c0_i32 = arith.constant 0 : i32
    %17 = vector.broadcast %c0_i32 : i32 to vector<8x1xi32>
    %18 = arith.cmpi sge, %1, %17 : vector<8x1xi32>
    %19 = arith.extui %18 : vector<8x1xi1> to vector<8x1xi32>
    %20 = arith.sitofp %19 : vector<8x1xi32> to vector<8x1xf32>
    %21 = arith.addf %3, %9 : vector<8x1xf32>
    %22 = arith.subf %21, %16 : vector<8x1xf32>
    %23 = arith.mulf %22, %20 : vector<8x1xf32>
    %24 = vector.shape_cast %23 : vector<8x1xf32> to vector<1x8x1xf32>
    %cst_6 = arith.constant dense<0.000000e+00> : vector<1xf32>
    %25 = vector.multi_reduction <add>, %24, %cst_6 [1, 2] : vector<1x8x1xf32> to vector<1xf32>
    %26 = vector.shape_cast %25 : vector<1xf32> to vector<1x1x1xf32>
    %27 = vector.extract %26[0, 0, 0] : f32 from vector<1x1x1xf32>
    %28 = vector.broadcast %27 : f32 to vector<1x1xf32>
    %29 = vector.shape_cast %28 : vector<1x1xf32> to vector<1x1xf32>
    %30 = vector.broadcast %29 : vector<1x1xf32> to vector<1x128xf32>
    %c0_7 = arith.constant 0 : index
    %c0_8 = arith.constant 0 : index
    %31 = vector.load %arg3[%c0_7, %c0_8] : memref<1x128xf32, #tpu.memory_space<vmem>>, vector<1x128xf32>
    tpu.vector_store %arg3[%c0_7, %c0_8], %30 {strides = array<i32>} : memref<1x128xf32, #tpu.memory_space<vmem>>, vector<1x128xf32>,
    return
  }
  func.func @transform_0(%arg0: i32) -> (i32, i32) {
    %c0_i32 = arith.constant 0 : i32
    %c0_i32_0 = arith.constant 0 : i32
    return %arg0, %c0_i32 : i32, i32
  }
  func.func @transform_1(%arg0: i32) -> (i32, i32) {
    %c0_i32 = arith.constant 0 : i32
    %c0_i32_0 = arith.constant 0 : i32
    return %arg0, %c0_i32 : i32, i32
  }
  func.func @transform_2(%arg0: i32) -> (i32, i32) {
    %c0_i32 = arith.constant 0 : i32
    %c0_i32_0 = arith.constant 0 : i32
    return %arg0, %c0_i32 : i32, i32
  }
}

</mosaic_0001>

<bundles_post_ra>
// kernel: tpu_custom_call.1
= control target key start
LH: loop header
LB: loop body
LE: loop exit
PB: predicated region body
PF: predicated region fallthrough
CT: control target
= control target key end

     0   :  { %vm14_vm0 = vcmask 130048   ;;  %s138_s0 = inlined_call_operand.vmem [shape: f32[8,16], index: 0, kind: input, shape index: {}]   ;;  %s139_s1 = inlined_call_operand.vmem [shape: s32[8,1], index: 1, kind: input, shape index: {}]   ;;  %s140_s2 = inlined_call_operand.hbm [shape: f32[1,128], index: 2, kind: output, shape index: {}]  }
   0x1   :  { %v12_v0 = vld [vmem:[%s138_s0] sm:$0xff] }
   0x2   :  { %7 = vsyncpa [#allocation3], 0  ;;  %v15_v1 = vsel %vm14_vm0, %v12_v0, -inf  ;;  %v108_v2 = vmov 0   ;;  %v13_v3 = vld [vmem:[%s139_s1] sm:$0xff]  ;;  %v26_v9 = vlaneseq  ;;  %v109_v19 = vmov 0.0  }
   0x3   :  { %77 = vset.pattern.permute.xlu0 %v108_v2  ;;  %vm36_vm2 = vcmp.ge.s32.totalorder %v13_v3, 0  ;;  %vm42_vm3 = vcmask 7168   ;;  %s110_s0 = smov [#allocation2]   ;;  %s62_s15 = sshll.u32 %s140_s2, 4  ;;  %s63_s15 = int_to_ptr.hbm [resolvable:$true] %s62_s15 }
   0x4   :  { %16 = vmax.xlane.f32.xlu0 %v15_v1  ;;  %v27_v10 = vand.u32 127, %v26_v9  ;;  %v71_v20 = vsel %vm36_vm2, 1.0, %v109_v19  ;;  %s60_s1 = sshll.u32 %s110_s0, 4  ;;  %s61_s1 = int_to_ptr.vmem [resolvable:$true] %s60_s1 }
  0x18   :  { %29 = vperm.xlu0 %77, %v13_v3  }
  0x77   :  { %v17_v4 = vpop.xlane.xlu0 %16 }
  0x78   :  { %v18_v5 = vsub.f32 %v12_v0, %v17_v4 }
  0x7a   :  { %v19_v6 = vmul.f32 1.442695, %v18_v5 }
  0x7c   :  { %78 = vpow2.f32 %v19_v6 }
  0x82   :  { %v79_v7 = vpop.eup %78 }
  0x83   :  { %v21_v8 = vsel %vm14_vm0, %v79_v7, 0.0 }
  0x84   :  { %22 = vadd.xlane.f32.xlu1 %v21_v8 }
  0x8a   :  { %v30_v11 = vpop.permute.xlu0 %29 }
  0x8b   :  { %vm31_vm1 = vcmp.eq.s32.totalorder %v27_v10, %v30_v11 }
  0x8c   :  { %v32_v12 = vsel %vm31_vm1, %v12_v0, 0.0 }
  0x8d   :  { %v33_v13 = vsel %vm14_vm0, %v32_v12, 0.0 }
  0x8e   :  { %34 = vadd.xlane.f32.xlu1 %v33_v13 }
  0xf7   :  { %v23_v14 = vpop.xlane.xlu1 %22 }
  0xf8   :  { %80 = vlog2.f32 %v23_v14 }
  0xfe   :  { %v81_v15 = vpop.eup %80 }
  0xff   :  { %v25_v16 = vmul.f32 0.6931472, %v81_v15 }
 0x101   :  { %v39_v17 = vadd.f32 %v25_v16, %v17_v4  ;;  %v35_v18 = vpop.xlane.xlu1 %34 }
 0x103   :  { %v40_v21 = vsub.f32 %v39_v17, %v35_v18 }
 0x105   :  { %v41_v22 = vmul.f32 %v71_v20, %v40_v21 }
 0x107   :  { %v43_v23 = vsel %vm42_vm3, %v41_v22, 0.0 }
 0x108   :  { %44 = vadd.xlane.f32.xlu2 %v43_v23 }
 0x17b   :  { %v45_v24 = vpop.xlane.xlu2 %44 }
 0x17c   :  { %v46_v25 = vrot.slane %v45_v24, 4 }
 0x17e   :  { %v47_v26 = vadd.f32 %v46_v25, %v45_v24 }
 0x180   :  { %v48_v27 = vrot.slane %v47_v26, 2 }
 0x182   :  { %v49_v28 = vadd.f32 %v48_v27, %v47_v26 }
 0x184   :  { %v50_v29 = vrot.slane %v49_v28, 1 }
 0x186   :  { %v51_v30 = vadd.f32 %v50_v29, %v49_v28 }
 0x188   :  { %72 = vpush %v51_v30 }
 0x1b9   :  { %s73_s16 = spop %72 }
 0x1ba   :  { %v53_v31 = vstv %s73_s16 }
 0x1bb   :  { %54 = vst [vmem:[#allocation2] sm:$0x1] %v53_v31 }
 0x1bc   :  { %65 = dma.vmem_to_hbm [thread:$0]  %s61_s1, 16, %s63_s15, [#allocation3]  }
 0x1bd   :  { %106 = dma.done.wait [#allocation3], 16  }
 0x1be   :  { %107 = vsyncadd [#allocation3], 4294967280 }
 0x1bf   :  { %70 = vsyncpa [#allocation3], 1 }

</bundles_post_ra>
